<compile_context>
chip_gen: v6e
topology: v6e:2x2x1
jax: 0.10.0
libtpu: 0.0.40
codegen_flags: <defaults>
</compile_context>

<pallas_src>
import functools

import jax
import jax.numpy as jnp
from jax import lax
from jax.experimental import pallas as pl
from jax.experimental.pallas import tpu as pltpu


_LANE = 128
_NEG_INF = float("-inf")
_STATIC_UNROLL = 8          # max fully-unrolled chunk count / fori_loop unroll


def _vmem_capacity_bytes():
    """Physical VMEM of the current TPU generation (conservative fallback)."""
    try:
        return int(pltpu.get_tpu_info().vmem_capacity_bytes)
    except Exception:
        return 64 << 20     # v7x-sized fallback: safe on every generation


def _largest_divisor_leq(n, cap):
    cap = max(1, min(int(n), int(cap)))
    for d in range(cap, 0, -1):
        if n % d == 0:
            return d
    return 1


def _spe_attention_kernel(x_ref, w1t_ref, w2t_ref, o_ref, max_acc,
                          *, s_total, s_tile, negative_slope):
    # x_ref   : (B_blk, C, s_tile)  native dtype
    # w1t_ref : (C, mid)  f32   conv1 1x1 weight, transposed
    # w2t_ref : (mid, C)  f32   conv2 1x1 weight, transposed
    # o_ref   : (B_blk, 1, C)  f32  lane-dense per-batch output
    # max_acc : (B_blk, C, _LANE)  acc dtype, running max across spatial axis
    s = pl.program_id(1)
    n_s = pl.num_programs(1)
    acc_dtype = max_acc.dtype

    @pl.when(s == 0)
    def _init():
        max_acc[...] = jnp.full(max_acc.shape, _NEG_INF, dtype=acc_dtype)

    n_full = s_tile // _LANE
    rem = s_tile - n_full * _LANE
    last_is_partial = (s_total % s_tile) != 0          # static Python bool

    def _accumulate(masked):
        # Pure vld + VPU max over 128-lane chunks; the single cross-lane
        # (XLU) reduce and the channel matmuls are deferred to the epilogue.
        acc = max_acc[...]
        if masked:
            bound = s_total - s * s_tile               # valid lanes this tile

        def fold(off, a):
            chunk = x_ref[:, :, pl.ds(off, _LANE)].astype(acc_dtype)
            if masked:
                lane = lax.broadcasted_iota(jnp.int32, chunk.shape, 2)
                chunk = jnp.where(off + lane < bound, chunk,
                                  jnp.asarray(_NEG_INF, dtype=acc_dtype))
            return jnp.maximum(a, chunk)

        if n_full > 0:
            if n_full <= _STATIC_UNROLL:
                for i in range(n_full):
                    acc = fold(i * _LANE, acc)
            else:
                acc = lax.fori_loop(
                    0, n_full,
                    lambda i, a: fold(pl.multiple_of(i * _LANE, _LANE), a),
                    acc, unroll=_STATIC_UNROLL)
        if rem:
            # Only reachable when s_tile == s_total (single spatial tile), so
            # the tail is always fully in-bounds -> no masking needed.
            tail = x_ref[:, :, n_full * _LANE:].astype(acc_dtype)
            acc = jnp.maximum(acc, jnp.max(tail, axis=-1, keepdims=True))
        max_acc[...] = acc

    if last_is_partial:
        # Full tiles skip the iota/compare/select entirely; only the partial
        # last tile pays for -inf masking.
        @pl.when(s < n_s - 1)
        def _full_tiles():
            _accumulate(masked=False)

        @pl.when(s == n_s - 1)
        def _partial_tile():
            _accumulate(masked=True)
    else:
        _accumulate(masked=False)

    @pl.when(s == n_s - 1)
    def _epilogue():
        # AdaptiveMaxPool2d((1,1)): one cross-lane reduce of the running max.
        pooled = jnp.max(max_acc[...], axis=-1).astype(jnp.float32)   # (B, C)
        # 1x1 convs on (N, C, 1, 1) == channel matmuls, batched over B_blk.
        h = jnp.dot(pooled, w1t_ref[...],
                    preferred_element_type=jnp.float32)               # (B, mid)
        h = jnp.where(h >= 0, h, negative_slope * h)                  # LeakyReLU
        y = jnp.dot(h, w2t_ref[...],
                    preferred_element_type=jnp.float32)               # (B, C)
        o_ref[...] = jax.nn.sigmoid(y)[:, None, :].astype(o_ref.dtype)


def spe_attention(x, w1, w2, *, negative_slope=0.01,
                  spatial_tile=None, batch_block=None):
    """SpeAttention (mode != 'mamba') forward.

    x : (N, C, H, W) float (kept in its native dtype for DMA + accumulation);
    w1: (C//r, C) conv1 1x1 weight (spatial dims squeezed);
    w2: (C, C//r) conv2 1x1 weight. Returns (N, C, 1, 1) float32.
    """
    N, C, H, W = x.shape
    mid = w1.shape[0]
    assert w1.shape == (mid, C) and w2.shape == (C, mid)
    S = H * W
    itemsize = jnp.dtype(x.dtype).itemsize

    # Max is exact in any float dtype -> accumulate in the native dtype
    # (halves vreg/vld traffic for bf16/f16 on v6e/v7x; v5e widens anyway).
    if jnp.dtype(x.dtype) in (jnp.dtype(jnp.bfloat16), jnp.dtype(jnp.float16),
                              jnp.dtype(jnp.float32)):
        acc_dtype = x.dtype
    else:
        acc_dtype = jnp.float32
    acc_itemsize = jnp.dtype(acc_dtype).itemsize

    # Generation-aware per-step block budget: ~16 MiB on v5e/v6e (128 MiB
    # VMEM), ~8 MiB on v7x (64 MiB VMEM), never below 2 MiB.
    total_vmem = _vmem_capacity_bytes()
    block_budget = max(2 << 20, min(total_vmem // 8, 16 << 20))

    # Spatial tile: biggest multiple of 128 lanes under the budget (or the
    # full extent when it fits, which is always a legal block shape).
    if spatial_tile is not None:
        s_tile = min(int(spatial_tile), S)
    elif C * S * itemsize <= block_budget:
        s_tile = S
    else:
        s_tile = max(_LANE, (block_budget // (C * itemsize)) // _LANE * _LANE)
        s_tile = min(s_tile, S)
    if s_tile != S:
        assert s_tile % _LANE == 0, \
            "spatial tile must be a multiple of 128 or the full extent"
    num_s = pl.cdiv(S, s_tile)

    # Batch blocking: when the whole spatial extent fits one tile, pack as
    # many batches per grid step as the budget allows (amortizes per-step
    # overhead; dominant win for small S).
    if batch_block is not None:
        assert N % batch_block == 0
        b_blk = int(batch_block)
    elif num_s == 1:
        per_batch = C * (s_tile * itemsize + _LANE * acc_itemsize)
        b_blk = _largest_divisor_leq(N, max(1, block_budget // max(1, per_batch)))
    else:
        b_blk = 1
    num_b = N // b_blk

    # Collapsing trailing dims of contiguous NCHW is free (no extra HBM pass);
    # spatial lands on lanes, channels on sublanes.
    x3 = x.reshape(N, C, S)
    w1t = jnp.asarray(w1, jnp.float32).T          # (C, mid)
    w2t = jnp.asarray(w2, jnp.float32).T          # (mid, C)

    kernel = functools.partial(
        _spe_attention_kernel,
        s_total=S, s_tile=s_tile, negative_slope=negative_slope)

    # Raise the scoped-VMEM limit to cover the double-buffered input blocks +
    # scratch + weights, with headroom, capped well under physical VMEM.
    block_bytes = b_blk * C * s_tile * itemsize
    needed = (2 * block_bytes                              # double-buffered x
              + b_blk * C * _LANE * acc_itemsize           # running-max scratch
              + 16 * C * mid                               # weight blocks (x2 bufs)
              + 8 * b_blk * C)                             # output block
    vmem_limit = int(min(total_vmem * 3 // 4,
                         max(needed + needed // 2, 32 << 20)))

    cost = pl.CostEstimate(
        flops=N * (C * S + 4 * C * mid),       # max-reduce compares + tiny matmuls
        transcendentals=N * C,                 # sigmoid
        bytes_accessed=N * C * S * itemsize + 2 * C * mid * 4 + N * C * 4,
    )

    out = pl.pallas_call(
        kernel,
        out_shape=jax.ShapeDtypeStruct((N, 1, C), jnp.float32),
        grid_spec=pltpu.PrefetchScalarGridSpec(
            num_scalar_prefetch=0,
            grid=(num_b, num_s),                       # spatial reduction last
            in_specs=[
                pl.BlockSpec((b_blk, C, s_tile), lambda b, s: (b, 0, s)),
                pl.BlockSpec((C, mid), lambda b, s: (0, 0)),
                pl.BlockSpec((mid, C), lambda b, s: (0, 0)),
            ],
            out_specs=pl.BlockSpec((b_blk, 1, C), lambda b, s: (b, 0, 0)),
            scratch_shapes=[pltpu.VMEM((b_blk, C, _LANE), acc_dtype)],
        ),
        compiler_params=pltpu.CompilerParams(
            dimension_semantics=("parallel", "arbitrary"),
            vmem_limit_bytes=vmem_limit),
        cost_estimate=cost,
    )(x3, w1t, w2t)

    # (N, 1, C) -> (N, C, 1, 1) is a pure reshape (middle dim is 1): free.
    return out.reshape(N, C, 1, 1)


def spe_attention_ref(x, w1, w2, negative_slope=0.01):
    """Pure-JAX reference for correctness."""
    pooled = jnp.max(x.astype(jnp.float32), axis=(2, 3))            # (N, C)
    h = pooled @ w1.astype(jnp.float32).T                           # (N, mid)
    h = jnp.where(h >= 0, h, negative_slope * h)
    y = h @ w2.astype(jnp.float32).T                                # (N, C)
    return jax.nn.sigmoid(y)[:, :, None, None]


if __name__ == "__main__":
    # Small shapes consistent with the module: spe_channels=32, se_ratio=8.
    N, C = 2, 32
    se_ratio = 8
    mid = C // se_ratio

    key = jax.random.PRNGKey(0)
    kx, k1, k2, kx2, kx3 = jax.random.split(key, 5)
    # Conv2d kernels with the 1x1 spatial dims squeezed away: (out_ch, in_ch).
    w1 = jax.random.normal(k1, (mid, C), dtype=jnp.float32) * 0.1
    w2 = jax.random.normal(k2, (C, mid), dtype=jnp.float32) * 0.1

    # Case 1: small spatial (S=256) -> single tile, batch-blocked grid step.
    x = jax.random.normal(kx, (N, C, 16, 16), dtype=jnp.float32)
    out = jax.block_until_ready(spe_attention(x, w1, w2))
    ref = spe_attention_ref(x, w1, w2)
    assert out.shape == (N, C, 1, 1)
    assert jnp.allclose(out, ref, atol=1e-5, rtol=1e-5), "mismatch (case 1)"

    # Case 2: forced 128-lane spatial tiles, partial (masked) last tile
    # (S = 272 -> 3 spatial steps, last one with only 16 valid lanes).
    x2 = jax.random.normal(kx2, (N, C, 16, 17), dtype=jnp.float32)
    out2 = jax.block_until_ready(spe_attention(x2, w1, w2, spatial_tile=128))
    ref2 = spe_attention_ref(x2, w1, w2)
    assert jnp.allclose(out2, ref2, atol=1e-5, rtol=1e-5), "mismatch (case 2)"

    # Case 3: bf16 input -> native-dtype running max (exact), f32 epilogue.
    xb = jax.random.normal(kx3, (N, C, 16, 16), dtype=jnp.float32).astype(jnp.bfloat16)
    out3 = jax.block_until_ready(spe_attention(xb, w1, w2))
    ref3 = spe_attention_ref(xb, w1, w2)
    assert jnp.allclose(out3, ref3, atol=1e-5, rtol=1e-5), "mismatch (case 3)"

    # Case 4: larger spatial (S=1600) -> fori_loop chunk path + lane tail.
    x4 = jax.random.normal(kx, (1, C, 40, 40), dtype=jnp.float32)
    out4 = jax.block_until_ready(spe_attention(x4, w1, w2))
    ref4 = spe_attention_ref(x4, w1, w2)
    assert jnp.allclose(out4, ref4, atol=1e-5, rtol=1e-5), "mismatch (case 4)"

    print("KERNEL_OK")
</pallas_src>

<mosaic_0001>
module attributes {stable_mosaic.version = 11 : i64} {
  func.func @_spe_attention_kernel(%arg0: i32, %arg1: i32, %arg2: memref<2x32x256xf32, #tpu.memory_space<vmem>>, %arg3: memref<32x4xf32, #tpu.memory_space<vmem>>, %arg4: memref<4x32xf32, #tpu.memory_space<vmem>>, %arg5: memref<2x1x32xf32, #tpu.memory_space<vmem>>, %arg6: memref<2x32x128xf32, #tpu.memory_space<vmem>>) attributes {dimension_semantics = [#tpu.dimension_semantics<parallel>, #tpu.dimension_semantics<arbitrary>], iteration_bounds = array<i64: 1, 1>, scalar_prefetch = 0 : i64, scratch_operands = 1 : i64, tpu.core_type = #tpu.core_type<tc>, window_params = [{transform_indices = @transform_0, window_bounds = array<i64: 2, 32, 256>}, {pipeline_mode = #tpu.pipeline_mode<synchronous>, transform_indices = @transform_1, window_bounds = array<i64: 32, 4>}, {pipeline_mode = #tpu.pipeline_mode<synchronous>, transform_indices = @transform_2, window_bounds = array<i64: 4, 32>}, {transform_indices = @transform_3, window_bounds = array<i64: 2, 1, 32>}]} {
    %c0_i32 = arith.constant 0 : i32
    %0 = arith.cmpi eq, %arg1, %c0_i32 : i32
    %1 = arith.extui %0 : i1 to i32
    %c0_i32_0 = arith.constant 0 : i32
    %2 = arith.cmpi ne, %1, %c0_i32_0 : i32
    scf.if %2 {
      %cst = arith.constant 0xFF800000 : f32
      %12 = vector.broadcast %cst : f32 to vector<2x32x128xf32>
      %c0_13 = arith.constant 0 : index
      %c0_14 = arith.constant 0 : index
      %c0_15 = arith.constant 0 : index
      %13 = vector.load %arg6[%c0_13, %c0_14, %c0_15] : memref<2x32x128xf32, #tpu.memory_space<vmem>>, vector<2x32x128xf32>
      tpu.vector_store %arg6[%c0_13, %c0_14, %c0_15], %12 {strides = array<i32>} : memref<2x32x128xf32, #tpu.memory_space<vmem>>, vector<2x32x128xf32>,
    } else {
    }
    %c0 = arith.constant 0 : index
    %c0_1 = arith.constant 0 : index
    %c0_2 = arith.constant 0 : index
    %3 = vector.load %arg6[%c0, %c0_1, %c0_2] : memref<2x32x128xf32, #tpu.memory_space<vmem>>, vector<2x32x128xf32>
    %c0_3 = arith.constant 0 : index
    %c0_4 = arith.constant 0 : index
    %c0_5 = arith.constant 0 : index
    %4 = vector.load %arg2[%c0_3, %c0_4, %c0_5] : memref<2x32x256xf32, #tpu.memory_space<vmem>>, vector<2x32x128xf32>
    %5 = arith.maximumf %3, %4 : vector<2x32x128xf32>
    %c0_6 = arith.constant 0 : index
    %c0_7 = arith.constant 0 : index
    %c128 = arith.constant 128 : index
    %6 = vector.load %arg2[%c0_6, %c0_7, %c128] : memref<2x32x256xf32, #tpu.memory_space<vmem>>, vector<2x32x128xf32>
    %7 = arith.maximumf %5, %6 : vector<2x32x128xf32>
    %c0_8 = arith.constant 0 : index
    %c0_9 = arith.constant 0 : index
    %c0_10 = arith.constant 0 : index
    %8 = vector.load %arg6[%c0_8, %c0_9, %c0_10] : memref<2x32x128xf32, #tpu.memory_space<vmem>>, vector<2x32x128xf32>
    tpu.vector_store %arg6[%c0_8, %c0_9, %c0_10], %7 {strides = array<i32>} : memref<2x32x128xf32, #tpu.memory_space<vmem>>, vector<2x32x128xf32>,
    %c0_i32_11 = arith.constant 0 : i32
    %9 = arith.cmpi eq, %arg1, %c0_i32_11 : i32
    %10 = arith.extui %9 : i1 to i32
    %c0_i32_12 = arith.constant 0 : i32
    %11 = arith.cmpi ne, %10, %c0_i32_12 : i32
    scf.if %11 {
      %c0_13 = arith.constant 0 : index
      %c0_14 = arith.constant 0 : index
      %c0_15 = arith.constant 0 : index
      %12 = vector.load %arg6[%c0_13, %c0_14, %c0_15] : memref<2x32x128xf32, #tpu.memory_space<vmem>>, vector<2x32x128xf32>
      %cst = arith.constant dense<0xFF800000> : vector<2x32xf32>
      %13 = vector.multi_reduction <maximumf>, %12, %cst [2] : vector<2x32x128xf32> to vector<2x32xf32>
      %c0_16 = arith.constant 0 : index
      %c0_17 = arith.constant 0 : index
      %14 = vector.load %arg3[%c0_16, %c0_17] : memref<32x4xf32, #tpu.memory_space<vmem>>, vector<32x4xf32>
      %cst_18 = arith.constant dense<0.000000e+00> : vector<2x4xf32>
      %15 = tpu.matmul %13, %14, %cst_18 {dimension_numbers = #tpu.dot_dimension_numbers<[1], [0], [0], [1], [0, 0, 1, 1], [], []>} : vector<2x32xf32>, vector<32x4xf32>, vector<2x4xf32> -> vector<2x4xf32>
      %cst_19 = arith.constant 0.000000e+00 : f32
      %16 = vector.broadcast %cst_19 : f32 to vector<2x4xf32>
      %17 = arith.cmpf oge, %15, %16 : vector<2x4xf32>
      %cst_20 = arith.constant 0.00999999977 : f32
      %18 = vector.broadcast %cst_20 : f32 to vector<2x4xf32>
      %19 = arith.mulf %18, %15 : vector<2x4xf32>
      %20 = arith.select %17, %15, %19 : vector<2x4xi1>, vector<2x4xf32>
      %c0_21 = arith.constant 0 : index
      %c0_22 = arith.constant 0 : index
      %21 = vector.load %arg4[%c0_21, %c0_22] : memref<4x32xf32, #tpu.memory_space<vmem>>, vector<4x32xf32>
      %cst_23 = arith.constant dense<0.000000e+00> : vector<2x32xf32>
      %22 = tpu.matmul %20, %21, %cst_23 {dimension_numbers = #tpu.dot_dimension_numbers<[1], [0], [0], [1], [0, 0, 1, 1], [], []>} : vector<2x4xf32>, vector<4x32xf32>, vector<2x32xf32> -> vector<2x32xf32>
      %23 = arith.negf %22 : vector<2x32xf32>
      %24 = math.exp %23 : vector<2x32xf32>
      %cst_24 = arith.constant 1.000000e+00 : f32
      %25 = vector.broadcast %cst_24 : f32 to vector<2x32xf32>
      %26 = arith.addf %25, %24 : vector<2x32xf32>
      %27 = arith.divf %25, %26 : vector<2x32xf32>
      %28 = vector.shape_cast %27 : vector<2x32xf32> to vector<2x1x32xf32>
      %c0_25 = arith.constant 0 : index
      %c0_26 = arith.constant 0 : index
      %c0_27 = arith.constant 0 : index
      %29 = vector.load %arg5[%c0_25, %c0_26, %c0_27] : memref<2x1x32xf32, #tpu.memory_space<vmem>>, vector<2x1x32xf32>
      tpu.vector_store %arg5[%c0_25, %c0_26, %c0_27], %28 {strides = array<i32>} : memref<2x1x32xf32, #tpu.memory_space<vmem>>, vector<2x1x32xf32>,
    } else {
    }
    return
  }
  func.func @transform_0(%arg0: i32, %arg1: i32) -> (i32, i32, i32) {
    %c0_i32 = arith.constant 0 : i32
    %c0_i32_0 = arith.constant 0 : i32
    return %arg0, %c0_i32, %arg1 : i32, i32, i32
  }
  func.func @transform_1(%arg0: i32, %arg1: i32) -> (i32, i32) {
    %c0_i32 = arith.constant 0 : i32
    %c0_i32_0 = arith.constant 0 : i32
    %c0_i32_1 = arith.constant 0 : i32
    return %c0_i32, %c0_i32_0 : i32, i32
  }
  func.func @transform_2(%arg0: i32, %arg1: i32) -> (i32, i32) {
    %c0_i32 = arith.constant 0 : i32
    %c0_i32_0 = arith.constant 0 : i32
    %c0_i32_1 = arith.constant 0 : i32
    return %c0_i32, %c0_i32_0 : i32, i32
  }
  func.func @transform_3(%arg0: i32, %arg1: i32) -> (i32, i32, i32) {
    %c0_i32 = arith.constant 0 : i32
    %c0_i32_0 = arith.constant 0 : i32
    %c0_i32_1 = arith.constant 0 : i32
    return %arg0, %c0_i32, %c0_i32_0 : i32, i32, i32
  }
}

</mosaic_0001>

<bundles_post_ra>
// kernel: tpu_custom_call.1
= control target key start
LH: loop header
LB: loop body
LE: loop exit
PB: predicated region body
PF: predicated region fallthrough
CT: control target
= control target key end

     0   :  { %8 = vsyncpa [#allocation4], 0  ;;  %s517_s0 = inlined_call_operand.hbm [shape: f32[2,32,256], index: 0, kind: input, shape index: {}]   ;;  %s518_s1 = inlined_call_operand.vmem [shape: f32[32,4], index: 1, kind: input, shape index: {}]   ;;  %s519_s2 = inlined_call_operand.vmem [shape: f32[4,32], index: 2, kind: input, shape index: {}]   ;;  %s520_s3 = inlined_call_operand.hbm [shape: f32[2,1,32], index: 3, kind: output, shape index: {}]  }
   0x1   :  { %9 = vsyncpa [#allocation5], 0  ;;  %s465_s12 = smov [#allocation3]  }
   0x2   :  { %s15_s13 = sshll.u32 %s465_s12, 4  ;;  %s16_s13 = int_to_ptr.vmem [resolvable:$true] %s15_s13 }
   0x3   :  { %s429_s14 = scalar_lea.vmem %s16_s13, 2048  ;;  %p434_p1 = scmp.lt.s32.totalorder %s16_s13, %s16_s13 }
   0x4   :  { %p430_p0 = scmp.ne.s32.totalorder %s16_s13, %s429_s14  ;;  %p435_p2 = scmp.lt.s32.totalorder %s429_s14, %s429_s14 }
   0x6   :  { %p436_p3 = por %p435_p2, %p434_p1 }
   0x8   :  { %p437_p4 = pnand %p436_p3, %p430_p0 }
   0xa   :  { %440 = shalt.err (!%p437_p4)
}
   0xb   :  { %s466_s15 = smov 256   ;;  %s467_s16 = smov 16  }
   0xc   :  { %21 = dma.hbm_to_vmem [thread:$0]  %s517_s0, 2048, %s16_s13, [#allocation4], %s466_s15, %s466_s15, %s467_s16  }
   0xd   :  { %461 = dma.done.wait [#allocation4], 2048  }
   0xe   :  { %462 = vsyncadd [#allocation4], 4294965248  ;;  %v53_v0 = vld [vmem:[#allocation3 + $0x40] sm:$0xff]  ;;  %v69_v1 = vld [vmem:[#allocation3 + $0x48] sm:$0xff]  ;;  %v468_v24 = vmov 0.0   ;;  %vm469_vm0 = vmmov 0   ;;  %v128_v29 = vlaneseq }
   0xf   :  { %v49_v2 = vld [vmem:[#allocation3] sm:$0xff]  ;;  %v77_v3 = vmax.f32 %v53_v0, %v69_v1  ;;  %v65_v4 = vld [vmem:[#allocation3 + $0x8] sm:$0xff]  ;;  %v54_v5 = vld [vmem:[#allocation3 + $0x50] sm:$0xff]  ;;  %393 = vmatprep.subr.mxu0 %v468_v24  ;;  %404 = vmatprep.subr.mxu1 %v468_v24  ;;  %vm139_vm1 = vcmask 130112   ;;  %vm146_vm2 = vcmask 195712   ;;  %vm153_vm3 = vcmask 261312  }
  0x10   :  { %v70_v6 = vld [vmem:[#allocation3 + $0x58] sm:$0xff]  ;;  %v73_v7 = vmax.f32 %v49_v2, %v65_v4  ;;  %v50_v8 = vld [vmem:[#allocation3 + $0x10] sm:$0xff]  ;;  %v55_v12 = vld [vmem:[#allocation3 + $0x60] sm:$0xff]  ;;  %401 = vmatprep.mubr.msk.f32.mxu0 %vm469_vm0, %v468_v24  ;;  %406 = vmatprep.mubr.msk.f32.mxu1 %vm469_vm0, %v468_v24  ;;  %v129_v30 = vand.u32 127, %v128_v29  ;;  %v131_v35 = vshrl.u32 %v128_v29, 7  ;;  %vm174_vm4 = vcmask 1041409  }
  0x11   :  { %v66_v9 = vld [vmem:[#allocation3 + $0x18] sm:$0xff]  ;;  %108 = vmax.xlane.f32.xlu1 %v77_v3  ;;  %v78_v10 = vmax.f32 %v54_v5, %v70_v6  ;;  %v71_v13 = vld [vmem:[#allocation3 + $0x68] sm:$0xff]  ;;  %v51_v14 = vld [vmem:[#allocation3 + $0x20] sm:$0xff]  ;;  %vm176_vm5 = vcmask 261120   ;;  %vm257_vm6 = vcmask 1043456   ;;  %vm253_vm8 = vcmask 31744  }
  0x12   :  { %100 = vmax.xlane.f32.xlu0 %v73_v7  ;;  %v74_v11 = vmax.f32 %v50_v8, %v66_v9  ;;  %v67_v15 = vld [vmem:[#allocation3 + $0x28] sm:$0xff]  ;;  %v79_v16 = vmax.f32 %v55_v12, %v71_v13  ;;  %v56_v18 = vld [vmem:[#allocation3 + $0x70] sm:$0xff]  ;;  %v72_v19 = vld [vmem:[#allocation3 + $0x78] sm:$0xff]  ;;  %v134_v33 = vadd.s32 4294967288, %v129_v30  ;;  %v141_v34 = vadd.s32 4294967280, %v129_v30 }
  0x13   :  { %v75_v17 = vmax.f32 %v51_v14, %v67_v15  ;;  %v52_v20 = vld [vmem:[#allocation3 + $0x30] sm:$0xff]  ;;  %v68_v21 = vld [vmem:[#allocation3 + $0x38] sm:$0xff]  ;;  %v80_v22 = vmax.f32 %v56_v18, %v72_v19  ;;  %v117_v27 = vld [vmem:[%s518_s1 + $0x8] sm:$0xff]  ;;  %v148_v39 = vadd.s32 4294967272, %v129_v30  ;;  %v132_v41 = vsub.s32 %v129_v30, %v131_v35 }
  0x14   :  { %v76_v23 = vmax.f32 %v52_v20, %v68_v21  ;;  %v119_v25 = vld [vmem:[%s518_s1 + $0x18] sm:$0xff]  ;;  %v118_v26 = vld [vmem:[%s518_s1 + $0x10] sm:$0xff]  ;;  %v116_v28 = vld [vmem:[%s518_s1] sm:$0xff]  ;;  %v137_v37 = vsub.s32 %v134_v33, %v131_v35  ;;  %v144_v40 = vsub.s32 %v141_v34, %v131_v35  ;;  %v470_v8 = vmov 1966171168  }
  0x15   :  { %110 = vmax.xlane.f32.xlu1 %v78_v10  ;;  %394 = vmatpush3.msra.mxu0 %v119_v25  ;;  %v151_v45 = vsub.s32 %v148_v39, %v131_v35  ;;  %v252_v62 = vld [vmem:[%s519_s2] sm:$0xf]  ;;  %v339_v9 = vunpack.c.l.s4 %v470_v8  ;;  %vm362_vm9 = vcmask 253952   ;;  %s471_s2 = smov [#allocation6]  }
  0x16   :  { %102 = vmax.xlane.f32.xlu0 %v74_v11  ;;  %395 = vmatprep.subr.mxu0 %v468_v24  ;;  %s370_s27 = sshll.u32 %s471_s2, 4  ;;  %s371_s27 = int_to_ptr.vmem [resolvable:$true] %s370_s27 }
  0x17   :  { %396 = vmatpush3.msra.mxu0 %v118_v26  ;;  %405 = vmatpush3.msk.msra.mxu1 %vm257_vm6, %v252_v62  ;;  %v340_v10 = vunpack.c.0.s8 %v339_v9  ;;  %s441_s28 = scalar_lea.vmem %s371_s27, 32  ;;  %p446_p6 = scmp.lt.s32.totalorder %s371_s27, %s371_s27 }
  0x18   :  { %397 = vmatprep.subr.mxu0 %v468_v24  ;;  %p442_p5 = scmp.ne.s32.totalorder %s371_s27, %s441_s28  ;;  %p447_p7 = scmp.lt.s32.totalorder %s441_s28, %s441_s28 }
  0x19   :  { %112 = vmax.xlane.f32.xlu1 %v79_v16  ;;  %398 = vmatpush3.msra.mxu0 %v117_v27  ;;  %v343_v11 = vsub.s32 %v340_v10, %v131_v35 }
  0x1a   :  { %104 = vmax.xlane.f32.xlu0 %v75_v17  ;;  %399 = vmatprep.subr.mxu0 %v468_v24  ;;  %p448_p8 = por %p447_p7, %p446_p6 }
  0x1b   :  { %400 = vmatpush3.msra.mxu0 %v116_v28 }
  0x1c   :  { %p449_p9 = pnand %p448_p8, %p442_p5 }
  0x1d   :  { %114 = vmax.xlane.f32.xlu1 %v80_v22 }
  0x1e   :  { %106 = vmax.xlane.f32.xlu0 %v76_v23 }
  0x9a   :  { %v109_v31 = vpop.xlane.xlu1 %108 }
  0x9b   :  { %v101_v32 = vpop.xlane.xlu0 %100  ;;  %v158_v48 = vrot.slane %v109_v31, %v132_v41 }
  0x9c   :  { %v133_v50 = vrot.slane %v101_v32, %v132_v41 }
  0x9e   :  { %v111_v36 = vpop.xlane.xlu1 %110 }
  0x9f   :  { %v103_v38 = vpop.xlane.xlu0 %102  ;;  %v162_v43 = vrot.slane %v111_v36, %v137_v37 }
  0xa0   :  { %v138_v46 = vrot.slane %v103_v38, %v137_v37 }
  0xa1   :  { %v163_v52 = vsel %vm139_vm1, %v162_v43, %v158_v48 }
  0xa2   :  { %v113_v42 = vpop.xlane.xlu1 %112  ;;  %v140_v55 = vsel %vm139_vm1, %v138_v46, %v133_v50 }
  0xa3   :  { %v105_v44 = vpop.xlane.xlu0 %104  ;;  %v167_v47 = vrot.slane %v113_v42, %v144_v40 }
  0xa4   :  { %v145_v49 = vrot.slane %v105_v44, %v144_v40 }
  0xa5   :  { %v168_v56 = vsel %vm146_vm2, %v167_v47, %v163_v52 }
  0xa6   :  { %v115_v51 = vpop.xlane.xlu1 %114  ;;  %v147_v58 = vsel %vm146_vm2, %v145_v49, %v140_v55 }
  0xa7   :  { %v172_v53 = vrot.slane %v115_v51, %v151_v45  ;;  %v107_v54 = vpop.xlane.xlu0 %106 }
  0xa8   :  { %v152_v57 = vrot.slane %v107_v54, %v151_v45 }
  0xa9   :  { %v173_v59 = vsel %vm153_vm3, %v172_v53, %v168_v56 }
  0xaa   :  { %v154_v60 = vsel %vm153_vm3, %v152_v57, %v147_v58 }
  0xab   :  { %v175_v61 = vsel %vm174_vm4, %v173_v59, %v154_v60 }
  0xac   :  { %402 = vmatmul.mubr.msk.f32.vlgmr.msra.gmra.mxu0 %vm176_vm5, %v175_v61 }
 0x16c   :  { %v245_v63 = vpop.f32.mrf.mxu0 }
 0x16d   :  { %vm249_vm7 = vcmp.ge.f32.partialorder %v245_v63, 0.0  ;;  %v250_v0 = vmul.f32 0.01, %v245_v63 }
 0x16e   :  { %v403_v1 = vpop.f32.mrf.mxu0 }
 0x16f   :  { %v251_v2 = vsel %vm249_vm7, %v245_v63, %v250_v0 }
 0x170   :  { %407 = vmatmul.mubr.msk.f32.vlgmr.msra.gmra.mxu1 %vm253_vm8, %v251_v2 }
 0x230   :  { %v327_v3 = vpop.f32.mrf.mxu1 }
 0x231   :  { %v385_v4 = vmul.f32 -1.442695, %v327_v3 }
 0x232   :  { %v408_v5 = vpop.f32.mrf.mxu1 }
 0x233   :  { %417 = vpow2.f32 %v385_v4 }
 0x240   :  { %v418_v6 = vpop.eup %417 }
 0x241   :  { %v334_v7 = vadd.f32 1.0, %v418_v6 }
 0x243   :  { %419 = vrcp.f32 %v334_v7 }
 0x250   :  { %v420_v12 = vpop.eup %419 }
 0x251   :  { %v344_v13 = vrot.slane %v420_v12, %v343_v11 }
 0x253   :  { %v345_v14 = vcombine.high %v344_v13, %v344_v13  ;;  %v352_v15 = vrot.slane %v344_v13, %v343_v11 }
 0x255   :  { %v359_v16 = vrot.slane %v345_v14, %v343_v11  ;;  %363 = vst.msk [vmem:[#allocation6] sm:$0x1] %vm362_vm9, %v352_v15 }
 0x257   :  { %364 = vst.msk [vmem:[#allocation6 + $0x1] sm:$0x1] %vm362_vm9, %v359_v16 }
 0x258   :  { %452 = shalt.err (!%p449_p9)
}
 0x259   :  { %s472_s29 = smov 1  }
 0x25a   :  { %376 = dma.vmem_to_hbm [thread:$0]  %s371_s27, 32, %s520_s3, [#allocation5], %s467_s16, %s467_s16, %s472_s29  }
 0x25b   :  { %463 = dma.done.wait [#allocation5], 32  }
 0x25c   :  { %464 = vsyncadd [#allocation5], 4294967264 }
 0x25d   :  { %380 = vsyncpa [#allocation4], 1 }
 0x25e   :  { %381 = vsyncpa [#allocation5], 1 }

</bundles_post_ra>
